<compile_context>
chip_gen: v5e
topology: v5e:2x2
jax: 0.10.0
libtpu: 0.0.40
codegen_flags: <defaults>
</compile_context>

<pallas_src>
import functools

import jax
import jax.numpy as jnp
from jax import lax
from jax.experimental import pallas as pl
from jax.experimental.pallas import tpu as pltpu


def _random_shift_kernel(pad, c, h, shift_ref, x_ref, o_ref):
    """One grid step: `bn` images, each stored flattened as (C*H, W).

    shift_ref: (2*N_padded,) int32 in SMEM; [2i] = sx (width), [2i+1] = sy (height).
    x_ref / o_ref: (bn, C*H, W) tiles in VMEM.
    """
    bn, ch, w = x_ref.shape
    assert ch == c * h
    ni = pl.program_id(0)

    # bf16 one-hots for bf16 inputs (exact); f32 otherwise.
    cdt = jnp.bfloat16 if x_ref.dtype == jnp.bfloat16 else jnp.float32

    # Iotas hoisted out of the image loop (JAX does not CSE broadcast_in_dim).
    row_out = lax.broadcasted_iota(jnp.int32, (h, h), 0)   # output row i
    row_src = lax.broadcasted_iota(jnp.int32, (h, h), 1)   # candidate source row k
    col_src = lax.broadcasted_iota(jnp.int32, (w, w), 0)   # candidate source col k
    col_out = lax.broadcasted_iota(jnp.int32, (w, w), 1)   # output col j

    def one_image(bi, carry):
        img = ni * bn + bi
        sx = shift_ref[2 * img]
        sy = shift_ref[2 * img + 1]

        # Column-selection one-hot, built ALREADY TRANSPOSED:
        #   Ct[k, j] = 1 iff k == clamp(j + sx - pad, 0, w-1)
        c_idx = jnp.clip(col_out + sx - pad, 0, w - 1)
        Ct = (col_src == c_idx).astype(jnp.float32).astype(cdt)

        # Row-selection one-hot: R[i, k] = 1 iff k == clamp(i + sy - pad, 0, h-1)
        r_idx = jnp.clip(row_out + sy - pad, 0, h - 1)
        R = (row_src == r_idx).astype(jnp.float32).astype(cdt)

        # Column gather for ALL channels at once: (C*H, W) @ (W, W) on the MXU.
        xi = x_ref[bi]
        if xi.dtype != cdt:
            xi = xi.astype(cdt)
        z = jnp.dot(xi, Ct, preferred_element_type=jnp.float32).astype(cdt)

        # Row gather per channel (small (H,H)@(H,W) matmuls); one write per image.
        parts = []
        for ci in range(c):
            zc = z[ci * h:(ci + 1) * h, :]
            parts.append(jnp.dot(R, zc, preferred_element_type=jnp.float32))
        y = parts[0] if c == 1 else jnp.concatenate(parts, axis=0)
        o_ref[bi] = y.astype(o_ref.dtype)
        return carry

    lax.fori_loop(0, bn, one_image, 0, unroll=True)


def _vmem_budget_bytes():
    """Budget for the double-buffered in+out tiles, tuned per TPU generation."""
    try:
        kind = jax.devices()[0].device_kind.lower()
    except Exception:  # pragma: no cover - conservative fallback
        kind = ""
    if "v5" in kind:
        return 12 * 1024 * 1024   # v5e: 16 MiB scoped-VMEM default; stay under it.
    if "v6" in kind:
        return 24 * 1024 * 1024   # v6e: plenty of VMEM; raised via vmem_limit_bytes.
    return 20 * 1024 * 1024       # v7x (64 MiB physical) and default: keep headroom.


def _pick_block_n(n, bytes_per_image, budget_bytes, max_bn=32):
    """Images per grid step: fits the VMEM budget and keeps the grid >= 2 steps."""
    cap = min(max_bn, max(1, n // 2))                       # >=2 steps for v7x megacore
    fit = max(1, budget_bytes // max(1, 4 * bytes_per_image))  # in+out, double-buffered
    cap = max(1, min(cap, fit))
    best_div = 1
    for bn in range(cap, 0, -1):
        if n % bn == 0:
            best_div = bn
            break
    # Prefer an exact divisor; if it wastes most of the budget, pad the batch instead.
    return best_div if best_div * 2 > cap else cap


def random_shifts_aug(x, shifts, pad, block_n=None):
    """Pallas TPU forward of drqv2's RandomShiftsAug.

    x:      (N, C, H, W) float32 / bfloat16
    shifts: (N, 2) int32 in [0, 2*pad]; [:, 0] = sx (width), [:, 1] = sy (height)
            (same ordering as the torch module's grid last dim).
    """
    n, c, h, w = x.shape
    assert h == w, "RandomShiftsAug requires square images"
    assert shifts.shape == (n, 2)

    bytes_per_image = c * h * w * x.dtype.itemsize
    if block_n is None:
        block_n = _pick_block_n(n, bytes_per_image, _vmem_budget_bytes())
    block_n = max(1, min(int(block_n), n))

    num_blocks = -(-n // block_n)
    n_padded = num_blocks * block_n

    # Flatten (C, H) in HBM (free) so the column gather is one big matmul with
    # no in-VMEM relayout even when H is not a multiple of 8.
    x_flat = x.reshape(n, c * h, w)
    # Flat 1-D shift table: sx0, sy0, sx1, sy1, ...  (1-D SMEM avoids (.,128) padding).
    shifts_flat = shifts.astype(jnp.int32).reshape(-1)

    if n_padded != n:
        x_flat = jnp.pad(x_flat, ((0, n_padded - n), (0, 0), (0, 0)))
        shifts_flat = jnp.pad(shifts_flat, (0, 2 * (n_padded - n)))

    grid_spec = pltpu.PrefetchScalarGridSpec(
        num_scalar_prefetch=1,  # shifts_flat lands in SMEM
        grid=(num_blocks,),
        in_specs=[pl.BlockSpec((block_n, c * h, w), lambda ni, s_ref: (ni, 0, 0))],
        out_specs=pl.BlockSpec((block_n, c * h, w), lambda ni, s_ref: (ni, 0, 0)),
    )

    itemsize = x.dtype.itemsize
    cost = pl.CostEstimate(
        flops=2 * n * c * h * w * (h + w),
        transcendentals=0,
        bytes_accessed=2 * n * c * h * w * itemsize + int(shifts_flat.size) * 4,
    )

    out_flat = pl.pallas_call(
        functools.partial(_random_shift_kernel, pad, c, h),
        out_shape=jax.ShapeDtypeStruct((n_padded, c * h, w), x.dtype),
        grid_spec=grid_spec,
        compiler_params=pltpu.CompilerParams(
            dimension_semantics=("parallel",),
            vmem_limit_bytes=32 * 1024 * 1024,
        ),
        cost_estimate=cost,
    )(shifts_flat, x_flat)

    return out_flat[:n].reshape(n, c, h, w)


def _reference(x, shifts, pad):
    n, c, h, w = x.shape
    idx = jnp.arange(h)
    outs = []
    for b in range(n):
        sx = shifts[b, 0]
        sy = shifts[b, 1]
        ri = jnp.clip(idx + sy - pad, 0, h - 1)
        ci = jnp.clip(idx + sx - pad, 0, w - 1)
        outs.append(x[b][:, ri][:, :, ci])
    return jnp.stack(outs)


if __name__ == "__main__":
    pad = 4
    key = jax.random.PRNGKey(0)
    kx, ks = jax.random.split(key)

    n, c, h, w = 2, 4, 16, 16
    x = jax.random.normal(kx, (n, c, h, w), dtype=jnp.float32)
    shifts = jax.random.randint(ks, (n, 2), 0, 2 * pad + 1, dtype=jnp.int32)

    # Random shifts, f32.
    out = jax.block_until_ready(random_shifts_aug(x, shifts, pad))
    ref = _reference(x, shifts, pad)
    assert out.shape == x.shape and out.dtype == x.dtype
    assert jnp.allclose(out, ref), "Pallas kernel mismatch vs reference (f32)"

    # Edge shifts (0 and 2*pad) exercise the replicate-padding / clamp path.
    edge_shifts = jnp.array([[0, 2 * pad], [2 * pad, 0]], dtype=jnp.int32)
    out_e = jax.block_until_ready(random_shifts_aug(x, edge_shifts, pad))
    assert jnp.allclose(out_e, _reference(x, edge_shifts, pad)), "mismatch (edge shifts)"

    # bf16 path (bf16 one-hots on the MXU; one-hot selection is exact).
    x_bf = x.astype(jnp.bfloat16)
    out_bf = jax.block_until_ready(random_shifts_aug(x_bf, shifts, pad))
    assert out_bf.dtype == jnp.bfloat16
    assert jnp.allclose(out_bf, _reference(x_bf, shifts, pad)), "mismatch (bf16)"

    print("KERNEL_OK")
</pallas_src>

<mosaic_0001>
module attributes {stable_mosaic.version = 11 : i64} {
  func.func @_random_shift_kernel(%arg0: i32, %arg1: memref<4xi32, #tpu.memory_space<smem>>, %arg2: memref<1x64x16xf32, #tpu.memory_space<vmem>>, %arg3: memref<1x64x16xf32, #tpu.memory_space<vmem>>) attributes {dimension_semantics = [#tpu.dimension_semantics<parallel>], iteration_bounds = array<i64: 2>, scalar_prefetch = 1 : i64, scratch_operands = 0 : i64, tpu.core_type = #tpu.core_type<tc>, window_params = [{transform_indices = @transform_0, window_bounds = array<i64: 1, 64, 16>}, {transform_indices = @transform_1, window_bounds = array<i64: 1, 64, 16>}]} {
    %0 = tpu.iota {dimensions = array<i32: 0>} : vector<16x16xi32>
    %1 = tpu.iota {dimensions = array<i32: 1>} : vector<16x16xi32>
    %2 = tpu.iota {dimensions = array<i32: 0>} : vector<16x16xi32>
    %3 = tpu.iota {dimensions = array<i32: 1>} : vector<16x16xi32>
    %c0_i32 = arith.constant 0 : i32
    %c1_i32 = arith.constant 1 : i32
    %4 = arith.muli %arg0, %c1_i32 : i32
    %5 = arith.addi %4, %c0_i32 : i32
    %c2_i32 = arith.constant 2 : i32
    %6 = arith.muli %c2_i32, %5 : i32
    %7 = arith.index_cast %6 : i32 to index
    %8 = memref.load %arg1[%7] : memref<4xi32, #tpu.memory_space<smem>>
    %c2_i32_0 = arith.constant 2 : i32
    %9 = arith.muli %c2_i32_0, %5 : i32
    %c1_i32_1 = arith.constant 1 : i32
    %10 = arith.addi %9, %c1_i32_1 : i32
    %11 = arith.index_cast %10 : i32 to index
    %12 = memref.load %arg1[%11] : memref<4xi32, #tpu.memory_space<smem>>
    %13 = vector.broadcast %8 : i32 to vector<16x16xi32>
    %14 = arith.addi %3, %13 : vector<16x16xi32>
    %c4_i32 = arith.constant 4 : i32
    %15 = vector.broadcast %c4_i32 : i32 to vector<16x16xi32>
    %16 = arith.subi %14, %15 : vector<16x16xi32>
    %c0_i32_2 = arith.constant 0 : i32
    %c15_i32 = arith.constant 15 : i32
    %17 = vector.broadcast %c0_i32_2 : i32 to vector<16x16xi32>
    %18 = arith.maxsi %17, %16 : vector<16x16xi32>
    %19 = vector.broadcast %c15_i32 : i32 to vector<16x16xi32>
    %20 = arith.minsi %19, %18 : vector<16x16xi32>
    %21 = arith.cmpi eq, %2, %20 : vector<16x16xi32>
    %22 = arith.extui %21 : vector<16x16xi1> to vector<16x16xi32>
    %23 = arith.sitofp %22 : vector<16x16xi32> to vector<16x16xf32>
    %24 = vector.broadcast %12 : i32 to vector<16x16xi32>
    %25 = arith.addi %0, %24 : vector<16x16xi32>
    %c4_i32_3 = arith.constant 4 : i32
    %26 = vector.broadcast %c4_i32_3 : i32 to vector<16x16xi32>
    %27 = arith.subi %25, %26 : vector<16x16xi32>
    %c0_i32_4 = arith.constant 0 : i32
    %c15_i32_5 = arith.constant 15 : i32
    %28 = vector.broadcast %c0_i32_4 : i32 to vector<16x16xi32>
    %29 = arith.maxsi %28, %27 : vector<16x16xi32>
    %30 = vector.broadcast %c15_i32_5 : i32 to vector<16x16xi32>
    %31 = arith.minsi %30, %29 : vector<16x16xi32>
    %32 = arith.cmpi eq, %1, %31 : vector<16x16xi32>
    %33 = arith.extui %32 : vector<16x16xi1> to vector<16x16xi32>
    %34 = arith.sitofp %33 : vector<16x16xi32> to vector<16x16xf32>
    %35 = arith.index_cast %c0_i32 : i32 to index
    %c0 = arith.constant 0 : index
    %c0_6 = arith.constant 0 : index
    %36 = vector.load %arg2[%35, %c0, %c0_6] : memref<1x64x16xf32, #tpu.memory_space<vmem>>, vector<1x64x16xf32>
    %37 = vector.shape_cast %36 : vector<1x64x16xf32> to vector<64x16xf32>
    %cst = arith.constant dense<0.000000e+00> : vector<64x16xf32>
    %38 = tpu.matmul %37, %23, %cst {dimension_numbers = #tpu.dot_dimension_numbers<[1], [0], [0], [1], [0, 0, 1, 1], [], []>} : vector<64x16xf32>, vector<16x16xf32>, vector<64x16xf32> -> vector<64x16xf32>
    %39 = vector.extract_strided_slice %38 {offsets = [0, 0], sizes = [16, 16], strides = [1, 1]} : vector<64x16xf32> to vector<16x16xf32>
    %cst_7 = arith.constant dense<0.000000e+00> : vector<16x16xf32>
    %40 = tpu.matmul %34, %39, %cst_7 {dimension_numbers = #tpu.dot_dimension_numbers<[1], [0], [0], [1], [0, 0, 1, 1], [], []>} : vector<16x16xf32>, vector<16x16xf32>, vector<16x16xf32> -> vector<16x16xf32>
    %41 = vector.extract_strided_slice %38 {offsets = [16, 0], sizes = [16, 16], strides = [1, 1]} : vector<64x16xf32> to vector<16x16xf32>
    %cst_8 = arith.constant dense<0.000000e+00> : vector<16x16xf32>
    %42 = tpu.matmul %34, %41, %cst_8 {dimension_numbers = #tpu.dot_dimension_numbers<[1], [0], [0], [1], [0, 0, 1, 1], [], []>} : vector<16x16xf32>, vector<16x16xf32>, vector<16x16xf32> -> vector<16x16xf32>
    %43 = vector.extract_strided_slice %38 {offsets = [32, 0], sizes = [16, 16], strides = [1, 1]} : vector<64x16xf32> to vector<16x16xf32>
    %cst_9 = arith.constant dense<0.000000e+00> : vector<16x16xf32>
    %44 = tpu.matmul %34, %43, %cst_9 {dimension_numbers = #tpu.dot_dimension_numbers<[1], [0], [0], [1], [0, 0, 1, 1], [], []>} : vector<16x16xf32>, vector<16x16xf32>, vector<16x16xf32> -> vector<16x16xf32>
    %45 = vector.extract_strided_slice %38 {offsets = [48, 0], sizes = [16, 16], strides = [1, 1]} : vector<64x16xf32> to vector<16x16xf32>
    %cst_10 = arith.constant dense<0.000000e+00> : vector<16x16xf32>
    %46 = tpu.matmul %34, %45, %cst_10 {dimension_numbers = #tpu.dot_dimension_numbers<[1], [0], [0], [1], [0, 0, 1, 1], [], []>} : vector<16x16xf32>, vector<16x16xf32>, vector<16x16xf32> -> vector<16x16xf32>
    %47 = tpu.concatenate %40, %42, %44, %46 in 0 : vector<16x16xf32>, vector<16x16xf32>, vector<16x16xf32>, vector<16x16xf32> -> vector<64x16xf32>
    %48 = arith.index_cast %c0_i32 : i32 to index
    %c0_11 = arith.constant 0 : index
    %c0_12 = arith.constant 0 : index
    %49 = vector.load %arg3[%48, %c0_11, %c0_12] : memref<1x64x16xf32, #tpu.memory_space<vmem>>, vector<1x64x16xf32>
    %50 = vector.shape_cast %49 : vector<1x64x16xf32> to vector<64x16xf32>
    %51 = vector.shape_cast %47 : vector<64x16xf32> to vector<1x64x16xf32>
    tpu.vector_store %arg3[%48, %c0_11, %c0_12], %51 {strides = array<i32>} : memref<1x64x16xf32, #tpu.memory_space<vmem>>, vector<1x64x16xf32>,
    %c1_i32_13 = arith.constant 1 : i32
    return
  }
  func.func @transform_0(%arg0: i32, %arg1: memref<4xi32, #tpu.memory_space<smem>>) -> (i32, i32, i32) {
    %c0_i32 = arith.constant 0 : i32
    %c0_i32_0 = arith.constant 0 : i32
    %c0_i32_1 = arith.constant 0 : i32
    return %arg0, %c0_i32, %c0_i32_0 : i32, i32, i32
  }
  func.func @transform_1(%arg0: i32, %arg1: memref<4xi32, #tpu.memory_space<smem>>) -> (i32, i32, i32) {
    %c0_i32 = arith.constant 0 : i32
    %c0_i32_0 = arith.constant 0 : i32
    %c0_i32_1 = arith.constant 0 : i32
    return %arg0, %c0_i32, %c0_i32_0 : i32, i32, i32
  }
}

</mosaic_0001>

<bundles_post_ra>
// kernel: tpu_custom_call.1
= control target key start
LH: loop header
LB: loop body
LE: loop exit
PB: predicated region body
PF: predicated region fallthrough
CT: control target
= control target key end

     0   :  { %s478_s12 = smov [#allocation3]   ;;  %s552_s0 = inlined_call_operand.vmem [shape: s32[4], index: 0, kind: input, shape index: {}]   ;;  %s553_s1 = inlined_call_operand.vmem [shape: f32[2,64,16], index: 1, kind: input, shape index: {}]   ;;  %s554_s2 = inlined_call_operand.vmem [shape: f32[2,64,16], index: 2, kind: output, shape index: {}]  }
   0x1   :  { %s8_s11 = sshll.u32 %s552_s0, 4  ;;  %s9_s11 = int_to_ptr.vmem [resolvable:$true] %s8_s11 }
   0x2   :  { %11 = dma.vmem_to_smem %s9_s11, 16, %s478_s12, [#allocation2] }
   0x3   :  { %472 = dma.done.wait [#allocation2], 16 }
   0x4   :  { %473 = vsyncadd [#allocation2], 4294967280 }
   0x5   :  { %14 = sfence }
   0x6   :  { %s499_s13 = smov 0  }
   0x7 LB: > { %s402_s14 = sadd.s32 4294967295, %s476_s13   ;;  %p406_p0 = scmp.ge.s32.totalorder %s476_s13, 1  ;;  %s476_s13 = sphi %s499_s13, %s20_s13  }
   0x8   : > { %p96_p1 = scmp.lt.s32.totalorder %s476_s13, 3 }
   0xa   : > { %p97_p2 = pnand %p406_p0, %p96_p1 }
   0xb   : > { %s411_s0 = sshll.u32 (!%p97_p2), %s402_s14, 1  ;;  %p116_p3 = scmp.lt.s32.totalorder (!%p97_p2), %s402_s14, 1 }
   0xc   : > { %100 = sbr.rel (%p97_p2) target bundleno = 327 (0x147), region = 24  ;;  %s132_s15 = sld [smem:[#allocation3 + %s411_s0]] (!%p97_p2) }
   0xd   : > { %s133_s16 = sadd.s32 (!%p97_p2), 1, %s411_s0 }
   0xe   : > { %s134_s17 = sld [smem:[#allocation3 + %s133_s16]] (!%p97_p2) }
  0x11   : > { %v126_v0 = vlaneseq  ;;  %s556_s14 = smov (!%p116_p3, %s402_s14), 1  ;;  %v479_v12 = vmov 1.0   ;;  %vm175_vm4 = vcmask 130048   ;;  %v480_v30 = vmov 0.0  }
  0x12   : > { %v135_v4 = vstv %s132_s15  ;;  %s439_s18 = sshll.u32 %s556_s14, 6 }
  0x13   : > { %v127_v1 = vshrl.u32 %v126_v0, 7  ;;  %v507_v2 = vand.u32 127, %v126_v0  ;;  %s120_s21 = scalar_lea.vmem %s553_s1, %s439_s18  ;;  %s125_s24 = scalar_lea.vmem %s554_s2, %s439_s18 }
  0x14   : > { %v148_v6 = vstv %s134_s17  ;;  %v167_v13 = vld [vmem:[%s120_s21] sm:$0xff]  ;;  %v173_v15 = vld [vmem:[%s120_s21 + $0x30] sm:$0xff]  ;;  %v168_v16 = vld [vmem:[%s120_s21 + $0x8] sm:$0xff] }
  0x15   : > { %v128_v3 = vadd.s32 8, %v127_v1  ;;  %v136_v5 = vadd.s32 %v135_v4, %v507_v2  ;;  %v149_v7 = vadd.s32 %v148_v6, %v127_v1  ;;  %v171_v14 = vld [vmem:[%s120_s21 + $0x20] sm:$0xff]  ;;  %v172_v17 = vld [vmem:[%s120_s21 + $0x28] sm:$0xff]  ;;  %v174_v18 = vld [vmem:[%s120_s21 + $0x38] sm:$0xff] }
  0x16   : > { %v169_v19 = vld [vmem:[%s120_s21 + $0x10] sm:$0xff]  ;;  %v170_v20 = vld [vmem:[%s120_s21 + $0x18] sm:$0xff] }
  0x17   : > { %v150_v8 = vadd.s32 %v148_v6, %v128_v3  ;;  %v412_v9 = vadd.s32 4294967292, %v136_v5  ;;  %v415_v21 = vadd.s32 4294967292, %v149_v7 }
  0x19   : > { %vm138_vm0 = vcmp.gt.s32.totalorder %v412_v9, 0  ;;  %vm153_vm5 = vcmp.gt.s32.totalorder %v415_v21, 0  ;;  %v416_v23 = vadd.s32 4294967292, %v150_v8 }
  0x1a   : > { %v139_v10 = vsel %vm138_vm0, %v412_v9, 0  ;;  %v154_v22 = vsel %vm153_vm5, %v415_v21, 0 }
  0x1b   : > { %vm140_vm1 = vcmp.lt.s32.totalorder %v139_v10, 15  ;;  %vm157_vm6 = vcmp.lt.s32.totalorder %v154_v22, 15  ;;  %vm155_vm7 = vcmp.gt.s32.totalorder %v416_v23, 0 }
  0x1c   : > { %v141_v11 = vsel %vm140_vm1, %v139_v10, 15  ;;  %v158_v25 = vsel %vm157_vm6, %v154_v22, 15  ;;  %v156_v26 = vsel %vm155_vm7, %v416_v23, 0 }
  0x1d   : > { %vm143_vm2 = vcmp.eq.s32.totalorder %v128_v3, %v141_v11  ;;  %vm142_vm3 = vcmp.eq.s32.totalorder %v127_v1, %v141_v11  ;;  %vm161_vm8 = vcmp.eq.s32.totalorder %v507_v2, %v158_v25  ;;  %vm159_vm9 = vcmp.lt.s32.totalorder %v156_v26, 15 }
  0x1e   : > { %419 = vmatpush.msk.msra.mxu0 %vm143_vm2, %v479_v12  ;;  %441 = vmatpush.msk.msra.mxu2 %vm143_vm2, %v479_v12  ;;  %v417_v31 = vsel %vm161_vm8, 1.0, %v480_v30  ;;  %v160_v32 = vsel %vm159_vm9, %v156_v26, 15 }
  0x1f   : > { %442 = vmatpush.msk.msra.mxu3 %vm143_vm2, %v479_v12  ;;  %vm162_vm10 = vcmp.eq.s32.totalorder %v507_v2, %v160_v32 }
  0x20   : > { %420 = vmatpush.msk.msra.mxu0 %vm142_vm3, %v479_v12  ;;  %443 = vmatpush.msk.msra.mxu2 %vm142_vm3, %v479_v12  ;;  %v418_v36 = vsel %vm162_vm10, 1.0, %v480_v30 }
  0x21   : > { %421 = vmatmul.msk.f32.vlgmr.msra.gmra.mxu0 %vm175_vm4, %v167_v13  ;;  %425 = vmatmul.msk.f32.vlgmr.msra.gmra.mxu2 %vm175_vm4, %v171_v14 }
  0x22   : > { %444 = vmatpush.msk.msra.mxu3 %vm142_vm3, %v479_v12 }
  0x23   : > { %427 = vmatmul.msk.f32.vlgmr.msra.gmra.mxu3 %vm175_vm4, %v173_v15 }
  0x29   : > { %422 = vmatmul.msk.f32.gmra.mxu0 %vm175_vm4, %v168_v16  ;;  %426 = vmatmul.msk.f32.gmra.mxu2 %vm175_vm4, %v172_v17 }
  0x2b   : > { %428 = vmatmul.msk.f32.gmra.mxu3 %vm175_vm4, %v174_v18 }
  0x31   : > { %423 = vmatmul.msk.f32.gmra.mxu0 %vm175_vm4, %v169_v19 }
  0x39   : > { %424 = vmatmul.msk.f32.gmra.mxu0 %vm175_vm4, %v170_v20 }
  0x9e   : > { %v217_v24 = vpop.f32.mrf.mxu0 }
  0xa4   : > { %v229_v27 = vpop.f32.mrf.mxu2 }
  0xa6   : > { %v220_v28 = vpop.f32.mrf.mxu0  ;;  %v235_v29 = vpop.f32.mrf.mxu3 }
  0xa7   : > { %261 = vmatpush.msra.mxu1 %v220_v28 }
  0xa9   : > { %262 = vmatpush.msra.mxu1 %v217_v24 }
  0xaa   : > { %429 = vmatmul.msk.f32.vlgmr.msra.gmra.mxu1 %vm175_vm4, %v417_v31 }
  0xac   : > { %v232_v33 = vpop.f32.mrf.mxu2 }
  0xad   : > { %307 = vmatpush.msrb.mxu3 %v232_v33 }
  0xae   : > { %v223_v34 = vpop.f32.mrf.mxu0  ;;  %v238_v35 = vpop.f32.mrf.mxu3 }
  0xaf   : > { %308 = vmatpush.msrb.mxu3 %v229_v27  ;;  %330 = vmatpush.msrb.mxu1 %v238_v35 }
  0xb0   : > { %433 = vmatmul.msk.f32.vlgmr.msrb.gmra.mxu3 %vm175_vm4, %v417_v31 }
  0xb1   : > { %331 = vmatpush.msrb.mxu1 %v235_v29 }
  0xb2   : > { %430 = vmatmul.msk.f32.gmra.mxu1 %vm175_vm4, %v418_v36 }
  0xb6   : > { %v226_v37 = vpop.f32.mrf.mxu0 }
  0xb7   : > { %284 = vmatpush.msrb.mxu2 %v226_v37 }
  0xb8   : > { %434 = vmatmul.msk.f32.gmra.mxu3 %vm175_vm4, %v418_v36 }
  0xb9   : > { %285 = vmatpush.msrb.mxu2 %v223_v34 }
  0xba   : > { %431 = vmatmul.msk.f32.vlgmr.msrb.gmra.mxu2 %vm175_vm4, %v417_v31  ;;  %435 = vmatmul.msk.f32.vlgmr.msrb.gmra.mxu1 %vm175_vm4, %v417_v31 }
  0xc2   : > { %432 = vmatmul.msk.f32.gmra.mxu2 %vm175_vm4, %v418_v36  ;;  %436 = vmatmul.msk.f32.gmra.mxu1 %vm175_vm4, %v418_v36 }
 0x127   : > { %v264_v38 = vpop.f32.mrf.mxu1 }
 0x128   : > { %339 = vst.msk [vmem:[%s125_s24] sm:$0xff] %vm175_vm4, %v264_v38 }
 0x12f   : > { %v267_v39 = vpop.f32.mrf.mxu1 }
 0x130   : > { %340 = vst.msk [vmem:[%s125_s24 + $0x8] sm:$0xff] %vm175_vm4, %v267_v39 }
 0x133   : > { %v310_v40 = vpop.f32.mrf.mxu3 }
 0x134   : > { %343 = vst.msk [vmem:[%s125_s24 + $0x20] sm:$0xff] %vm175_vm4, %v310_v40 }
 0x137   : > { %v333_v41 = vpop.f32.mrf.mxu1 }
 0x138   : > { %345 = vst.msk [vmem:[%s125_s24 + $0x30] sm:$0xff] %vm175_vm4, %v333_v41 }
 0x13b   : > { %v313_v42 = vpop.f32.mrf.mxu3 }
 0x13c   : > { %344 = vst.msk [vmem:[%s125_s24 + $0x28] sm:$0xff] %vm175_vm4, %v313_v42 }
 0x13d   : > { %v287_v43 = vpop.f32.mrf.mxu2 }
 0x13e   : > { %341 = vst.msk [vmem:[%s125_s24 + $0x10] sm:$0xff] %vm175_vm4, %v287_v43 }
 0x13f   : > { %v336_v44 = vpop.f32.mrf.mxu1 }
 0x140   : > { %346 = vst.msk [vmem:[%s125_s24 + $0x38] sm:$0xff] %vm175_vm4, %v336_v44 }
 0x145   : > { %v290_v45 = vpop.f32.mrf.mxu2 }
 0x146   : > { %342 = vst.msk [vmem:[%s125_s24 + $0x18] sm:$0xff] %vm175_vm4, %v290_v45 }
 0x147 PF: > { %s20_s13 = sadd.s32 1, %s476_s13  }
 0x148   : > { %p17_p4 = scmp.ge.s32.totalorder %s20_s13, 4  }
 0x14a   :  { %19 = sbr.rel (!%p17_p4) target bundleno = 7 (0x7), region = 54 }

</bundles_post_ra>
